<compile_context>
chip_gen: v6e
topology: v6e:2x2x1
jax: 0.10.0
libtpu: 0.0.40
codegen_flags: <defaults>
</compile_context>

<pallas_src>
import jax
import jax.numpy as jnp
from jax.experimental import pallas as pl
from jax.experimental.pallas import tpu as pltpu


def _round_up(n, m):
    return ((n + m - 1) // m) * m


def qnet_kernel(x_ref, w1_ref, b1_ref, w2_ref, b2_ref, w3_ref, b3_ref, out_ref):
    x = x_ref[...]

    # fc1 + ReLU
    h1 = jnp.dot(x, w1_ref[...], preferred_element_type=jnp.float32) + b1_ref[...]
    h1 = jnp.maximum(h1, 0.0)

    # fc2 + ReLU
    h2 = jnp.dot(h1, w2_ref[...], preferred_element_type=jnp.float32) + b2_ref[...]
    h2 = jnp.maximum(h2, 0.0)

    # fc3 (no activation)
    out = jnp.dot(h2, w3_ref[...], preferred_element_type=jnp.float32) + b3_ref[...]
    out_ref[...] = out.astype(out_ref.dtype)


def qnetwork_forward(x, params, tile_b=2048):
    """x: (B, input_dim) float32. params: dict of w1,b1,w2,b2,w3,b3.

    Weights stored as (in_features, out_features) so y = x @ W + b
    (transposed vs. PyTorch's nn.Linear (out, in) storage; identical math).
    """
    w1, b1 = params["w1"], params["b1"]
    w2, b2 = params["w2"], params["b2"]
    w3, b3 = params["w3"], params["b3"]

    B, input_dim = x.shape
    n_actions = w3.shape[1]

    # --- batch tile selection --------------------------------------------
    # Aim for >= 2 grid steps (dual-TC on v7x) while keeping tiles large
    # enough to amortize per-grid-step overhead; tile rows are a multiple of
    # 8 (sublane) unless the whole (small) batch fits in one block.
    TB = min(tile_b, _round_up(pl.cdiv(B, 2), 8))
    TB = max(TB, 8)
    if TB >= B:
        TB = B  # single full-extent block (legal: equals array dim)
    num_tiles = pl.cdiv(B, TB)

    def const_spec(shape):
        # Whole (tiny) array as one block, VMEM-resident across all steps.
        return pl.BlockSpec(shape, lambda i: (0, 0))

    out = pl.pallas_call(
        qnet_kernel,
        out_shape=jax.ShapeDtypeStruct((B, n_actions), jnp.float32),
        grid=(num_tiles,),
        in_specs=[
            pl.BlockSpec((TB, input_dim), lambda i: (i, 0)),  # streamed x
            const_spec(w1.shape), const_spec(b1.shape),
            const_spec(w2.shape), const_spec(b2.shape),
            const_spec(w3.shape), const_spec(b3.shape),
        ],
        out_specs=pl.BlockSpec((TB, n_actions), lambda i: (i, 0)),
        compiler_params=pltpu.CompilerParams(
            dimension_semantics=("parallel",),  # dual-TC sharding on v7x
        ),
    )(x, w1, b1, w2, b2, w3, b3)

    return out


def init_params(key, input_dim, n_actions, hidden=24):
    """Deterministic init mimicking nn.Linear's U(-1/sqrt(fan_in), 1/sqrt(fan_in))."""
    ks = jax.random.split(key, 6)

    def lin(kw, kb, fan_in, fan_out):
        bound = 1.0 / jnp.sqrt(jnp.float32(fan_in))
        w = jax.random.uniform(kw, (fan_in, fan_out), jnp.float32, -bound, bound)
        b = jax.random.uniform(kb, (1, fan_out), jnp.float32, -bound, bound)
        return w, b

    w1, b1 = lin(ks[0], ks[1], input_dim, hidden)
    w2, b2 = lin(ks[2], ks[3], hidden, hidden)
    w3, b3 = lin(ks[4], ks[5], hidden, n_actions)
    return {"w1": w1, "b1": b1, "w2": w2, "b2": b2, "w3": w3, "b3": b3}


def _reference(x, params):
    h1 = jnp.maximum(x @ params["w1"] + params["b1"], 0.0)
    h2 = jnp.maximum(h1 @ params["w2"] + params["b2"], 0.0)
    return h2 @ params["w3"] + params["b3"]


if __name__ == "__main__":
    key = jax.random.PRNGKey(0)
    k_x, k_x2, k_p = jax.random.split(key, 3)

    batch = 2
    input_dim = 8
    n_actions = 4

    params = init_params(k_p, input_dim, n_actions)

    # Small single-tile case (batch=2, full-extent block).
    x = jax.random.normal(k_x, (batch, input_dim), dtype=jnp.float32)
    out = jax.block_until_ready(qnetwork_forward(x, params))
    ref = _reference(x, params)
    assert out.shape == (batch, n_actions)
    assert jnp.allclose(out, ref, atol=1e-5, rtol=1e-5)

    # Multi-tile case with a ragged tail (exercises grid pipelining and the
    # automatic boundary-block handling with no wrapper-side padding).
    x2 = jax.random.normal(k_x2, (200, input_dim), dtype=jnp.float32)
    out2 = jax.block_until_ready(qnetwork_forward(x2, params, tile_b=64))
    ref2 = _reference(x2, params)
    assert out2.shape == (200, n_actions)
    assert jnp.allclose(out2, ref2, atol=1e-5, rtol=1e-5)

    print("KERNEL_OK")
</pallas_src>

<mosaic_0001>
module attributes {stable_mosaic.version = 11 : i64} {
  func.func @qnet_kernel(%arg0: i32, %arg1: memref<2x8xf32, #tpu.memory_space<vmem>>, %arg2: memref<8x24xf32, #tpu.memory_space<vmem>>, %arg3: memref<1x24xf32, #tpu.memory_space<vmem>>, %arg4: memref<24x24xf32, #tpu.memory_space<vmem>>, %arg5: memref<1x24xf32, #tpu.memory_space<vmem>>, %arg6: memref<24x4xf32, #tpu.memory_space<vmem>>, %arg7: memref<1x4xf32, #tpu.memory_space<vmem>>, %arg8: memref<2x4xf32, #tpu.memory_space<vmem>>) attributes {dimension_semantics = [#tpu.dimension_semantics<parallel>], iteration_bounds = array<i64: 1>, scalar_prefetch = 0 : i64, scratch_operands = 0 : i64, tpu.core_type = #tpu.core_type<tc>, window_params = [{transform_indices = @transform_0, window_bounds = array<i64: 2, 8>}, {pipeline_mode = #tpu.pipeline_mode<synchronous>, transform_indices = @transform_1, window_bounds = array<i64: 8, 24>}, {pipeline_mode = #tpu.pipeline_mode<synchronous>, transform_indices = @transform_2, window_bounds = array<i64: 1, 24>}, {pipeline_mode = #tpu.pipeline_mode<synchronous>, transform_indices = @transform_3, window_bounds = array<i64: 24, 24>}, {pipeline_mode = #tpu.pipeline_mode<synchronous>, transform_indices = @transform_4, window_bounds = array<i64: 1, 24>}, {pipeline_mode = #tpu.pipeline_mode<synchronous>, transform_indices = @transform_5, window_bounds = array<i64: 24, 4>}, {pipeline_mode = #tpu.pipeline_mode<synchronous>, transform_indices = @transform_6, window_bounds = array<i64: 1, 4>}, {transform_indices = @transform_7, window_bounds = array<i64: 2, 4>}]} {
    %c0 = arith.constant 0 : index
    %c0_0 = arith.constant 0 : index
    %0 = vector.load %arg1[%c0, %c0_0] : memref<2x8xf32, #tpu.memory_space<vmem>>, vector<2x8xf32>
    %c0_1 = arith.constant 0 : index
    %c0_2 = arith.constant 0 : index
    %1 = vector.load %arg2[%c0_1, %c0_2] : memref<8x24xf32, #tpu.memory_space<vmem>>, vector<8x24xf32>
    %cst = arith.constant dense<0.000000e+00> : vector<2x24xf32>
    %2 = tpu.matmul %0, %1, %cst {dimension_numbers = #tpu.dot_dimension_numbers<[1], [0], [0], [1], [0, 0, 1, 1], [], []>} : vector<2x8xf32>, vector<8x24xf32>, vector<2x24xf32> -> vector<2x24xf32>
    %c0_3 = arith.constant 0 : index
    %c0_4 = arith.constant 0 : index
    %3 = vector.load %arg3[%c0_3, %c0_4] : memref<1x24xf32, #tpu.memory_space<vmem>>, vector<1x24xf32>
    %4 = vector.broadcast %3 : vector<1x24xf32> to vector<2x24xf32>
    %5 = arith.addf %2, %4 : vector<2x24xf32>
    %cst_5 = arith.constant 0.000000e+00 : f32
    %6 = vector.broadcast %cst_5 : f32 to vector<2x24xf32>
    %7 = arith.maximumf %5, %6 : vector<2x24xf32>
    %c0_6 = arith.constant 0 : index
    %c0_7 = arith.constant 0 : index
    %8 = vector.load %arg4[%c0_6, %c0_7] : memref<24x24xf32, #tpu.memory_space<vmem>>, vector<24x24xf32>
    %cst_8 = arith.constant dense<0.000000e+00> : vector<2x24xf32>
    %9 = tpu.matmul %7, %8, %cst_8 {dimension_numbers = #tpu.dot_dimension_numbers<[1], [0], [0], [1], [0, 0, 1, 1], [], []>} : vector<2x24xf32>, vector<24x24xf32>, vector<2x24xf32> -> vector<2x24xf32>
    %c0_9 = arith.constant 0 : index
    %c0_10 = arith.constant 0 : index
    %10 = vector.load %arg5[%c0_9, %c0_10] : memref<1x24xf32, #tpu.memory_space<vmem>>, vector<1x24xf32>
    %11 = vector.broadcast %10 : vector<1x24xf32> to vector<2x24xf32>
    %12 = arith.addf %9, %11 : vector<2x24xf32>
    %cst_11 = arith.constant 0.000000e+00 : f32
    %13 = vector.broadcast %cst_11 : f32 to vector<2x24xf32>
    %14 = arith.maximumf %12, %13 : vector<2x24xf32>
    %c0_12 = arith.constant 0 : index
    %c0_13 = arith.constant 0 : index
    %15 = vector.load %arg6[%c0_12, %c0_13] : memref<24x4xf32, #tpu.memory_space<vmem>>, vector<24x4xf32>
    %cst_14 = arith.constant dense<0.000000e+00> : vector<2x4xf32>
    %16 = tpu.matmul %14, %15, %cst_14 {dimension_numbers = #tpu.dot_dimension_numbers<[1], [0], [0], [1], [0, 0, 1, 1], [], []>} : vector<2x24xf32>, vector<24x4xf32>, vector<2x4xf32> -> vector<2x4xf32>
    %c0_15 = arith.constant 0 : index
    %c0_16 = arith.constant 0 : index
    %17 = vector.load %arg7[%c0_15, %c0_16] : memref<1x4xf32, #tpu.memory_space<vmem>>, vector<1x4xf32>
    %18 = vector.broadcast %17 : vector<1x4xf32> to vector<2x4xf32>
    %19 = arith.addf %16, %18 : vector<2x4xf32>
    %c0_17 = arith.constant 0 : index
    %c0_18 = arith.constant 0 : index
    %20 = vector.load %arg8[%c0_17, %c0_18] : memref<2x4xf32, #tpu.memory_space<vmem>>, vector<2x4xf32>
    tpu.vector_store %arg8[%c0_17, %c0_18], %19 {strides = array<i32>} : memref<2x4xf32, #tpu.memory_space<vmem>>, vector<2x4xf32>,
    return
  }
  func.func @transform_0(%arg0: i32) -> (i32, i32) {
    %c0_i32 = arith.constant 0 : i32
    %c0_i32_0 = arith.constant 0 : i32
    return %arg0, %c0_i32 : i32, i32
  }
  func.func @transform_1(%arg0: i32) -> (i32, i32) {
    %c0_i32 = arith.constant 0 : i32
    %c0_i32_0 = arith.constant 0 : i32
    %c0_i32_1 = arith.constant 0 : i32
    return %c0_i32, %c0_i32_0 : i32, i32
  }
  func.func @transform_2(%arg0: i32) -> (i32, i32) {
    %c0_i32 = arith.constant 0 : i32
    %c0_i32_0 = arith.constant 0 : i32
    %c0_i32_1 = arith.constant 0 : i32
    return %c0_i32, %c0_i32_0 : i32, i32
  }
  func.func @transform_3(%arg0: i32) -> (i32, i32) {
    %c0_i32 = arith.constant 0 : i32
    %c0_i32_0 = arith.constant 0 : i32
    %c0_i32_1 = arith.constant 0 : i32
    return %c0_i32, %c0_i32_0 : i32, i32
  }
  func.func @transform_4(%arg0: i32) -> (i32, i32) {
    %c0_i32 = arith.constant 0 : i32
    %c0_i32_0 = arith.constant 0 : i32
    %c0_i32_1 = arith.constant 0 : i32
    return %c0_i32, %c0_i32_0 : i32, i32
  }
  func.func @transform_5(%arg0: i32) -> (i32, i32) {
    %c0_i32 = arith.constant 0 : i32
    %c0_i32_0 = arith.constant 0 : i32
    %c0_i32_1 = arith.constant 0 : i32
    return %c0_i32, %c0_i32_0 : i32, i32
  }
  func.func @transform_6(%arg0: i32) -> (i32, i32) {
    %c0_i32 = arith.constant 0 : i32
    %c0_i32_0 = arith.constant 0 : i32
    %c0_i32_1 = arith.constant 0 : i32
    return %c0_i32, %c0_i32_0 : i32, i32
  }
  func.func @transform_7(%arg0: i32) -> (i32, i32) {
    %c0_i32 = arith.constant 0 : i32
    %c0_i32_0 = arith.constant 0 : i32
    return %arg0, %c0_i32 : i32, i32
  }
}

</mosaic_0001>

<bundles_post_ra>
// kernel: tpu_custom_call.1
= control target key start
LH: loop header
LB: loop body
LE: loop exit
PB: predicated region body
PF: predicated region fallthrough
CT: control target
= control target key end

     0   :  { %12 = vsyncpa [#allocation3], 0  ;;  %s514_s0 = inlined_call_operand.hbm [shape: f32[2,8], index: 0, kind: input, shape index: {}]   ;;  %s515_s1 = inlined_call_operand.vmem [shape: f32[8,24], index: 1, kind: input, shape index: {}]   ;;  %s516_s2 = inlined_call_operand.vmem [shape: f32[1,24], index: 2, kind: input, shape index: {}]   ;;  %s517_s3 = inlined_call_operand.vmem [shape: f32[24,24], index: 3, kind: input, shape index: {}]   ;;  %s518_s4 = inlined_call_operand.hbm [shape: f32[1,24], index: 4, kind: input, shape index: {}]   ;;  %s519_s5 = inlined_call_operand.vmem [shape: f32[24,4], index: 5, kind: input, shape index: {}]   ;;  %s520_s6 = inlined_call_operand.vmem [shape: f32[1,4], index: 6, kind: input, shape index: {}]   ;;  %s521_s7 = inlined_call_operand.hbm [shape: f32[2,4], index: 7, kind: output, shape index: {}]  }
   0x1   :  { %13 = vsyncpa [#allocation6], 0 }
   0x2   :  { %14 = vsyncpa [#allocation4], 0  ;;  %s431_s24 = smov [#allocation2]   ;;  %s432_s26 = smov [#allocation5]  }
   0x3   :  { %s21_s25 = sshll.u32 %s431_s24, 4  ;;  %s37_s27 = sshll.u32 %s432_s26, 4  ;;  %s22_s25 = int_to_ptr.vmem [resolvable:$true] %s21_s25  ;;  %s38_s27 = int_to_ptr.vmem [resolvable:$true] %s37_s27 }
   0x4   :  { %s373_s28 = scalar_lea.vmem %s22_s25, 32  ;;  %p378_p1 = scmp.lt.s32.totalorder %s22_s25, %s22_s25 }
   0x5   :  { %p374_p0 = scmp.ne.s32.totalorder %s22_s25, %s373_s28  ;;  %p379_p2 = scmp.lt.s32.totalorder %s373_s28, %s373_s28 }
   0x7   :  { %p380_p3 = por %p379_p2, %p378_p1 }
   0x9   :  { %p381_p4 = pnand %p380_p3, %p374_p0 }
   0xb   :  { %384 = shalt.err (!%p381_p4)
}
   0xc   :  { %24 = dma.hbm_to_vmem [thread:$0]  %s514_s0, 32, %s22_s25, [#allocation3]  }
   0xd   :  { %s393_s8 = scalar_lea.vmem %s38_s27, 16  ;;  %s397_s9 = scalar_lea.vmem %s38_s27, 32 }
   0xe   :  { %p394_p5 = scmp.ne.s32.totalorder %s38_s27, %s393_s8  ;;  %p398_p6 = scmp.lt.s32.totalorder %s38_s27, %s38_s27 }
   0xf   :  { %p399_p7 = scmp.lt.s32.totalorder %s397_s9, %s393_s8 }
  0x11   :  { %p400_p8 = por %p399_p7, %p398_p6 }
  0x13   :  { %p401_p9 = pnand %p400_p8, %p394_p5 }
  0x15   :  { %404 = shalt.err (!%p401_p9)
}
  0x16   :  { %40 = dma.hbm_to_vmem [thread:$0]  %s518_s4, 16, %s38_s27, [#allocation6]  }
  0x17   :  { %425 = dma.done.wait [#allocation3], 32  }
  0x18   :  { %426 = vsyncadd [#allocation3], 4294967264 }
  0x19   :  { %427 = dma.done.wait [#allocation6], 16  }
  0x1a   :  { %428 = vsyncadd [#allocation6], 4294967280  ;;  %v433_v0 = vmov 0.0   ;;  %vm434_vm0 = vmmov 0   ;;  %vm60_vm1 = vcmask 64512   ;;  %v52_v1 = vld [vmem:[%s515_s1] sm:$0xff] }
  0x1b   :  { %337 = vmatprep.subr.mxu0 %v433_v0  ;;  %339 = vmatprep.mubr.msk.f32.mxu0 %vm434_vm0, %v433_v0  ;;  %v51_v2 = vld [vmem:[#allocation2] sm:$0x3]  ;;  %v137_v3 = vld [vmem:[%s517_s3 + $0x10] sm:$0xff]  ;;  %v136_v4 = vld [vmem:[%s517_s3 + $0x8] sm:$0xff]  ;;  %vm145_vm2 = vcmask 195584   ;;  %s435_s25 = smov [#allocation7]  }
  0x1c   :  { %342 = vmatprep.subr.mxu1 %v433_v0  ;;  %348 = vmatprep.mubr.msk.f32.mxu1 %vm434_vm0, %v433_v0  ;;  %v135_v5 = vld [vmem:[%s517_s3] sm:$0xff]  ;;  %v222_v11 = vld [vmem:[%s519_s5 + $0x10] sm:$0xff]  ;;  %v221_v12 = vld [vmem:[%s519_s5 + $0x8] sm:$0xff]  ;;  %s311_s26 = sshll.u32 %s435_s25, 4  ;;  %vm303_vm3 = vcmask 25600   ;;  %s312_s26 = int_to_ptr.vmem [resolvable:$true] %s311_s26 }
  0x1d   :  { %338 = vmatpush3.msra.mxu0 %v52_v1  ;;  %343 = vmatpush3.msra.mxu1 %v137_v3  ;;  %v321_v6 = vld [vmem:[%s516_s2] ss:$0 sm:$0xff]  ;;  %v323_v14 = vld [vmem:[#allocation5] ss:$0 sm:$0xff]  ;;  %p410_p11 = scmp.lt.s32.totalorder %s312_s26, %s312_s26 }
  0x1e   :  { %340 = vmatmul.mubr.msk.f32.vlgmr.msra.gmra.mxu0 %vm60_vm1, %v51_v2  ;;  %351 = vmatprep.subr.mxu0 %v433_v0  ;;  %v220_v13 = vld [vmem:[%s519_s5] sm:$0xff]  ;;  %s405_s5 = scalar_lea.vmem %s312_s26, 32 }
  0x1f   :  { %357 = vmatprep.mubr.msk.f32.mxu0 %vm434_vm0, %v433_v0  ;;  %344 = vmatprep.subr.mxu1 %v433_v0  ;;  %v325_v19 = vld [vmem:[%s520_s6] ss:$0 sm:$0xff]  ;;  %p406_p10 = scmp.ne.s32.totalorder %s312_s26, %s405_s5  ;;  %p411_p12 = scmp.lt.s32.totalorder %s405_s5, %s405_s5 }
  0x20   :  { %345 = vmatpush3.msra.mxu1 %v136_v4  ;;  %352 = vmatpush3.msra.mxu0 %v222_v11 }
  0x21   :  { %346 = vmatprep.subr.mxu1 %v433_v0  ;;  %353 = vmatprep.subr.mxu0 %v433_v0  ;;  %p412_p13 = por %p411_p12, %p410_p11 }
  0x22   :  { %347 = vmatpush3.msra.mxu1 %v135_v5  ;;  %354 = vmatpush3.msra.mxu0 %v221_v12 }
  0x23   :  { %355 = vmatprep.subr.mxu0 %v433_v0  ;;  %p413_p0 = pnand %p412_p13, %p406_p10 }
  0x24   :  { %356 = vmatpush3.msra.mxu0 %v220_v13 }
  0xde   :  { %v130_v7 = vpop.f32.mrf.mxu0 }
  0xdf   :  { %v131_v8 = vadd.f32 %v321_v6, %v130_v7 }
  0xe0   :  { %v341_v9 = vpop.f32.mrf.mxu0 }
  0xe1   :  { %v134_v10 = vmax.f32 %v131_v8, 0.0 }
  0xe3   :  { %349 = vmatmul.mubr.msk.f32.vlgmr.msra.gmra.mxu1 %vm145_vm2, %v134_v10 }
 0x1a3   :  { %v215_v15 = vpop.f32.mrf.mxu1 }
 0x1a4   :  { %v216_v16 = vadd.f32 %v323_v14, %v215_v15 }
 0x1a5   :  { %v350_v17 = vpop.f32.mrf.mxu1 }
 0x1a6   :  { %v219_v18 = vmax.f32 %v216_v16, 0.0 }
 0x1a8   :  { %358 = vmatmul.mubr.msk.f32.vlgmr.msra.gmra.mxu0 %vm145_vm2, %v219_v18 }
 0x268   :  { %v299_v20 = vpop.f32.mrf.mxu0 }
 0x269   :  { %v300_v21 = vadd.f32 %v325_v19, %v299_v20 }
 0x26a   :  { %v359_v22 = vpop.f32.mrf.mxu0 }
 0x26b   :  { %304 = vst.msk [vmem:[#allocation7] sm:$0x3] %vm303_vm3, %v300_v21 }
 0x26c   :  { %416 = shalt.err (!%p413_p0)
}
 0x26d   :  { %314 = dma.vmem_to_hbm [thread:$0]  %s312_s26, 32, %s521_s7, [#allocation4]  }
 0x26e   :  { %429 = dma.done.wait [#allocation4], 32  }
 0x26f   :  { %430 = vsyncadd [#allocation4], 4294967264 }
 0x270   :  { %318 = vsyncpa [#allocation3], 1 }
 0x271   :  { %319 = vsyncpa [#allocation6], 1 }
 0x272   :  { %320 = vsyncpa [#allocation4], 1 }

</bundles_post_ra>
